<compile_context>
chip_gen: v6e
topology: v6e:2x2x1
jax: 0.10.0
libtpu: 0.0.40
codegen_flags: <defaults>
</compile_context>

<pallas_src>
import math

import jax
import jax.numpy as jnp
from jax.experimental import pallas as pl
from jax.experimental.pallas import tpu as pltpu


def embedfc_kernel(x_ref, w1_ref, b1_ref, w2_ref, b2_ref, o_ref):
    """o = GELU(x @ W1 + b1) @ W2 + b2 on one (rows, features) tile."""
    # Native-dtype operands into the MXU, f32 accumulation.
    h = jnp.dot(x_ref[...], w1_ref[...], preferred_element_type=jnp.float32)
    h = h + b1_ref[...].astype(jnp.float32)

    # Exact (erf-based) GELU, matching torch.nn.GELU() default.
    g = 0.5 * h * (1.0 + jax.lax.erf(h * jnp.float32(1.0 / math.sqrt(2.0))))

    o = jnp.dot(g.astype(w2_ref.dtype), w2_ref[...],
                preferred_element_type=jnp.float32)
    o = o + b2_ref[...].astype(jnp.float32)
    o_ref[...] = o.astype(o_ref.dtype)


def _round_up(x, m):
    return ((x + m - 1) // m) * m


def _pack_factor(input_dim, emb_dim, lane=128, max_pack=16, max_dim=1024):
    """Rows packed into the lane dim so both feature dims become multiples of
    128 (lane-dense, unmasked vld/vst). Falls back to 1 (natural layout) when
    the packing would blow up the weight blocks."""
    p1 = lane // math.gcd(lane, input_dim)
    p2 = lane // math.gcd(lane, emb_dim)
    p = p1 * p2 // math.gcd(p1, p2)
    if p == 1:
        return 1
    if p > max_pack or p * input_dim > max_dim or p * emb_dim > max_dim:
        return 1
    return p


def _block_diag(w, p):
    """(din, dout) -> (p*din, p*dout) block-diagonal with p copies of w."""
    if p == 1:
        return w
    din, dout = w.shape
    eye = jnp.eye(p, dtype=w.dtype)
    return jnp.einsum("ab,ij->aibj", eye, w).reshape(p * din, p * dout)


def embed_fc(x, w1, b1, w2, b2, *, tile_rows_target=512):
    """Pallas EmbedFC.forward.

    x  : any shape whose trailing dims flatten to input_dim (x.view(-1, input_dim))
    w1 : (input_dim, emb_dim),  b1 : (emb_dim,)
    w2 : (emb_dim, emb_dim),    b2 : (emb_dim,)
    returns (N, emb_dim)
    """
    input_dim, emb_dim = w1.shape

    # PyTorch glue: x.view(-1, input_dim)
    x2d = x.reshape(-1, input_dim)
    n = x2d.shape[0]

    # --- wrapper-side layout plumbing (no kernel math) --------------------
    p = _pack_factor(input_dim, emb_dim)
    row_unit = 8 * p                       # sublane granularity in logical rows
    tile_rows = min(_round_up(tile_rows_target, row_unit),
                    _round_up(n, row_unit))
    n_pad = _round_up(n, tile_rows)
    grid = n_pad // tile_rows

    if n_pad != n:
        x2d = jnp.pad(x2d, ((0, n_pad - n), (0, 0)))

    # Row-major reinterpretation: P logical rows per lane-row.
    x_packed = x2d.reshape(n_pad // p, p * input_dim)
    w1_wide = _block_diag(w1, p)
    w2_wide = _block_diag(w2, p)
    b1_wide = jnp.tile(b1.reshape(1, emb_dim), (1, p))
    b2_wide = jnp.tile(b2.reshape(1, emb_dim), (1, p))

    rows_blk = tile_rows // p              # sublane rows per grid step (mult. of 8)
    din_w = p * input_dim                  # lane-dense when p > 1
    dout_w = p * emb_dim

    out_packed = pl.pallas_call(
        embedfc_kernel,
        out_shape=jax.ShapeDtypeStruct((n_pad // p, dout_w), x2d.dtype),
        grid_spec=pl.GridSpec(
            grid=(grid,),
            in_specs=[
                pl.BlockSpec((rows_blk, din_w), lambda i: (i, 0)),   # x streams
                pl.BlockSpec((din_w, dout_w), lambda i: (0, 0)),     # W1 resident
                pl.BlockSpec((1, dout_w), lambda i: (0, 0)),         # b1 resident
                pl.BlockSpec((dout_w, dout_w), lambda i: (0, 0)),    # W2 resident
                pl.BlockSpec((1, dout_w), lambda i: (0, 0)),         # b2 resident
            ],
            out_specs=pl.BlockSpec((rows_blk, dout_w), lambda i: (i, 0)),
        ),
        compiler_params=pltpu.CompilerParams(
            dimension_semantics=("parallel",),        # 2 TCs on v7x; neutral v5e/v6e
            vmem_limit_bytes=32 * 1024 * 1024,        # headroom under v7x's 64 MiB
        ),
    )(x_packed, w1_wide, b1_wide, w2_wide, b2_wide)

    # Undo the lane packing / padding.
    out = out_packed.reshape(n_pad, emb_dim)[:n]
    return out


def _reference(x, w1, b1, w2, b2):
    input_dim = w1.shape[0]
    x2d = x.reshape(-1, input_dim)
    h = x2d @ w1 + b1
    g = 0.5 * h * (1.0 + jax.lax.erf(h / jnp.sqrt(2.0)))
    return g @ w2 + b2


if __name__ == "__main__":
    # Module hyperparameters (small, consistent with EmbedFC usage).
    input_dim = 16
    emb_dim = 32
    batch = 8

    key = jax.random.PRNGKey(0)
    kx, k1, k2, k3, k4 = jax.random.split(key, 5)

    x = jax.random.normal(kx, (batch, input_dim), dtype=jnp.float32)

    # Parameter init mimicking torch.nn.Linear default (U[-1/sqrt(fan_in), ..]).
    bound1 = 1.0 / math.sqrt(input_dim)
    w1 = jax.random.uniform(k1, (input_dim, emb_dim), jnp.float32, -bound1, bound1)
    b1 = jax.random.uniform(k2, (emb_dim,), jnp.float32, -bound1, bound1)
    bound2 = 1.0 / math.sqrt(emb_dim)
    w2 = jax.random.uniform(k3, (emb_dim, emb_dim), jnp.float32, -bound2, bound2)
    b2 = jax.random.uniform(k4, (emb_dim,), jnp.float32, -bound2, bound2)

    out = embed_fc(x, w1, b1, w2, b2)
    out = jax.block_until_ready(out)

    ref = _reference(x, w1, b1, w2, b2)
    assert out.shape == (batch, emb_dim), out.shape
    err = float(jnp.max(jnp.abs(out - ref)))
    assert jnp.allclose(out, ref, atol=2e-5, rtol=2e-5), err

    print("KERNEL_OK")
</pallas_src>

<mosaic_0001>
module attributes {stable_mosaic.version = 11 : i64} {
  func.func @embedfc_kernel(%arg0: i32, %arg1: memref<8x128xf32, #tpu.memory_space<vmem>>, %arg2: memref<128x256xf32, #tpu.memory_space<vmem>>, %arg3: memref<1x256xf32, #tpu.memory_space<vmem>>, %arg4: memref<256x256xf32, #tpu.memory_space<vmem>>, %arg5: memref<1x256xf32, #tpu.memory_space<vmem>>, %arg6: memref<8x256xf32, #tpu.memory_space<vmem>>) attributes {dimension_semantics = [#tpu.dimension_semantics<parallel>], iteration_bounds = array<i64: 1>, scalar_prefetch = 0 : i64, scratch_operands = 0 : i64, tpu.core_type = #tpu.core_type<tc>, window_params = [{transform_indices = @transform_0, window_bounds = array<i64: 8, 128>}, {pipeline_mode = #tpu.pipeline_mode<synchronous>, transform_indices = @transform_1, window_bounds = array<i64: 128, 256>}, {pipeline_mode = #tpu.pipeline_mode<synchronous>, transform_indices = @transform_2, window_bounds = array<i64: 1, 256>}, {pipeline_mode = #tpu.pipeline_mode<synchronous>, transform_indices = @transform_3, window_bounds = array<i64: 256, 256>}, {pipeline_mode = #tpu.pipeline_mode<synchronous>, transform_indices = @transform_4, window_bounds = array<i64: 1, 256>}, {transform_indices = @transform_5, window_bounds = array<i64: 8, 256>}]} {
    %c0 = arith.constant 0 : index
    %c0_0 = arith.constant 0 : index
    %0 = vector.load %arg1[%c0, %c0_0] : memref<8x128xf32, #tpu.memory_space<vmem>>, vector<8x128xf32>
    %c0_1 = arith.constant 0 : index
    %c0_2 = arith.constant 0 : index
    %1 = vector.load %arg2[%c0_1, %c0_2] : memref<128x256xf32, #tpu.memory_space<vmem>>, vector<128x256xf32>
    %cst = arith.constant dense<0.000000e+00> : vector<8x256xf32>
    %2 = tpu.matmul %0, %1, %cst {dimension_numbers = #tpu.dot_dimension_numbers<[1], [0], [0], [1], [0, 0, 1, 1], [], []>} : vector<8x128xf32>, vector<128x256xf32>, vector<8x256xf32> -> vector<8x256xf32>
    %c0_3 = arith.constant 0 : index
    %c0_4 = arith.constant 0 : index
    %3 = vector.load %arg3[%c0_3, %c0_4] : memref<1x256xf32, #tpu.memory_space<vmem>>, vector<1x256xf32>
    %4 = vector.broadcast %3 : vector<1x256xf32> to vector<8x256xf32>
    %5 = arith.addf %2, %4 : vector<8x256xf32>
    %cst_5 = arith.constant 5.000000e-01 : f32
    %6 = vector.broadcast %cst_5 : f32 to vector<8x256xf32>
    %7 = arith.mulf %6, %5 : vector<8x256xf32>
    %cst_6 = arith.constant 0.707106769 : f32
    %8 = vector.broadcast %cst_6 : f32 to vector<8x256xf32>
    %9 = arith.mulf %5, %8 : vector<8x256xf32>
    %10 = math.erf %9 : vector<8x256xf32>
    %cst_7 = arith.constant 1.000000e+00 : f32
    %11 = vector.broadcast %cst_7 : f32 to vector<8x256xf32>
    %12 = arith.addf %11, %10 : vector<8x256xf32>
    %13 = arith.mulf %7, %12 : vector<8x256xf32>
    %c0_8 = arith.constant 0 : index
    %c0_9 = arith.constant 0 : index
    %14 = vector.load %arg4[%c0_8, %c0_9] : memref<256x256xf32, #tpu.memory_space<vmem>>, vector<256x256xf32>
    %cst_10 = arith.constant dense<0.000000e+00> : vector<8x256xf32>
    %15 = tpu.matmul %13, %14, %cst_10 {dimension_numbers = #tpu.dot_dimension_numbers<[1], [0], [0], [1], [0, 0, 1, 1], [], []>} : vector<8x256xf32>, vector<256x256xf32>, vector<8x256xf32> -> vector<8x256xf32>
    %c0_11 = arith.constant 0 : index
    %c0_12 = arith.constant 0 : index
    %16 = vector.load %arg5[%c0_11, %c0_12] : memref<1x256xf32, #tpu.memory_space<vmem>>, vector<1x256xf32>
    %17 = vector.broadcast %16 : vector<1x256xf32> to vector<8x256xf32>
    %18 = arith.addf %15, %17 : vector<8x256xf32>
    %c0_13 = arith.constant 0 : index
    %c0_14 = arith.constant 0 : index
    %19 = vector.load %arg6[%c0_13, %c0_14] : memref<8x256xf32, #tpu.memory_space<vmem>>, vector<8x256xf32>
    tpu.vector_store %arg6[%c0_13, %c0_14], %18 {strides = array<i32>} : memref<8x256xf32, #tpu.memory_space<vmem>>, vector<8x256xf32>,
    return
  }
  func.func @transform_0(%arg0: i32) -> (i32, i32) {
    %c0_i32 = arith.constant 0 : i32
    %c0_i32_0 = arith.constant 0 : i32
    return %arg0, %c0_i32 : i32, i32
  }
  func.func @transform_1(%arg0: i32) -> (i32, i32) {
    %c0_i32 = arith.constant 0 : i32
    %c0_i32_0 = arith.constant 0 : i32
    %c0_i32_1 = arith.constant 0 : i32
    return %c0_i32, %c0_i32_0 : i32, i32
  }
  func.func @transform_2(%arg0: i32) -> (i32, i32) {
    %c0_i32 = arith.constant 0 : i32
    %c0_i32_0 = arith.constant 0 : i32
    %c0_i32_1 = arith.constant 0 : i32
    return %c0_i32, %c0_i32_0 : i32, i32
  }
  func.func @transform_3(%arg0: i32) -> (i32, i32) {
    %c0_i32 = arith.constant 0 : i32
    %c0_i32_0 = arith.constant 0 : i32
    %c0_i32_1 = arith.constant 0 : i32
    return %c0_i32, %c0_i32_0 : i32, i32
  }
  func.func @transform_4(%arg0: i32) -> (i32, i32) {
    %c0_i32 = arith.constant 0 : i32
    %c0_i32_0 = arith.constant 0 : i32
    %c0_i32_1 = arith.constant 0 : i32
    return %c0_i32, %c0_i32_0 : i32, i32
  }
  func.func @transform_5(%arg0: i32) -> (i32, i32) {
    %c0_i32 = arith.constant 0 : i32
    %c0_i32_0 = arith.constant 0 : i32
    return %arg0, %c0_i32 : i32, i32
  }
}

</mosaic_0001>

<bundles_post_ra>
// kernel: tpu_custom_call.1
= control target key start
LH: loop header
LB: loop body
LE: loop exit
PB: predicated region body
PF: predicated region fallthrough
CT: control target
= control target key end

     0   :  { %10 = vsyncpa [#allocation3], 0  ;;  %s503_s0 = inlined_call_operand.hbm [shape: f32[8,128], index: 0, kind: input, shape index: {}]   ;;  %s504_s1 = inlined_call_operand.hbm [shape: f32[128,256], index: 1, kind: input, shape index: {}]   ;;  %s505_s2 = inlined_call_operand.vmem [shape: f32[1,256], index: 2, kind: input, shape index: {}]   ;;  %s506_s3 = inlined_call_operand.hbm [shape: f32[256,256], index: 3, kind: input, shape index: {}]   ;;  %s507_s4 = inlined_call_operand.vmem [shape: f32[1,256], index: 4, kind: input, shape index: {}]   ;;  %s508_s5 = inlined_call_operand.hbm [shape: f32[8,256], index: 5, kind: output, shape index: {}]  }
   0x1   :  { %11 = vsyncpa [#allocation6], 0 }
   0x2   :  { %12 = vsyncpa [#allocation4], 0  ;;  %s448_s18 = smov [#allocation5]  }
   0x3   :  { %s28_s19 = sshll.u32 %s448_s18, 4  ;;  %s29_s19 = int_to_ptr.vmem [resolvable:$true] %s28_s19 }
   0x4   :  { %s370_s20 = scalar_lea.vmem %s29_s19, 4096  ;;  %p375_p1 = scmp.lt.s32.totalorder %s29_s19, %s29_s19 }
   0x5   :  { %p371_p0 = scmp.ne.s32.totalorder %s29_s19, %s370_s20  ;;  %p376_p2 = scmp.lt.s32.totalorder %s370_s20, %s370_s20 }
   0x7   :  { %p377_p3 = por %p376_p2, %p375_p1 }
   0x9   :  { %p378_p4 = pnand %p377_p3, %p371_p0 }
   0xb   :  { %381 = shalt.err (!%p378_p4)
}
   0xc   :  { %s449_s21 = smov 256   ;;  %s450_s22 = smov 16  }
   0xd   :  { %34 = dma.hbm_to_vmem [thread:$0]  %s504_s1, 4096, %s29_s19, [#allocation6], %s449_s21, %s449_s21, %s450_s22  }
   0xe   :  { %s451_s25 = smov [#allocation2]   ;;  %s452_s27 = smov [#allocation7]  }
   0xf   :  { %s19_s26 = sshll.u32 %s451_s25, 4  ;;  %s42_s28 = sshll.u32 %s452_s27, 4  ;;  %s20_s26 = int_to_ptr.vmem [resolvable:$true] %s19_s26  ;;  %s43_s28 = int_to_ptr.vmem [resolvable:$true] %s42_s28 }
  0x10   :  { %s390_s29 = scalar_lea.vmem %s20_s26, 128  ;;  %p395_p6 = scmp.lt.s32.totalorder %s20_s26, %s20_s26 }
  0x11   :  { %p391_p5 = scmp.ne.s32.totalorder %s20_s26, %s390_s29  ;;  %p396_p7 = scmp.lt.s32.totalorder %s390_s29, %s390_s29 }
  0x13   :  { %p397_p8 = por %p396_p7, %p395_p6 }
  0x15   :  { %p398_p9 = pnand %p397_p8, %p391_p5 }
  0x17   :  { %401 = shalt.err (!%p398_p9)
}
  0x18   :  { %22 = dma.hbm_to_vmem [thread:$0]  %s503_s0, 128, %s20_s26, [#allocation3]  }
  0x19   :  { %s410_s7 = scalar_lea.vmem %s43_s28, 8192  ;;  %p415_p11 = scmp.lt.s32.totalorder %s43_s28, %s43_s28 }
  0x1a   :  { %p411_p10 = scmp.ne.s32.totalorder %s43_s28, %s410_s7  ;;  %p416_p12 = scmp.lt.s32.totalorder %s410_s7, %s410_s7 }
  0x1c   :  { %p417_p13 = por %p416_p12, %p415_p11 }
  0x1e   :  { %p418_p0 = pnand %p417_p13, %p411_p10 }
  0x20   :  { %421 = shalt.err (!%p418_p0)
}
  0x21   :  { %48 = dma.hbm_to_vmem [thread:$0]  %s506_s3, 8192, %s43_s28, [#allocation6], %s449_s21, %s449_s21, %s450_s22  }
  0x22   :  { %442 = dma.done.wait [#allocation3], 128  }
  0x23   :  { %443 = vsyncadd [#allocation3], 4294967168 }
  0x24   :  { %444 = dma.done.wait [#allocation6], 12288  }
  0x25   :  { %445 = vsyncadd [#allocation6], 4294955008  ;;  %v453_v0 = vmov 0.0   ;;  %v92_v1 = vld [vmem:[#allocation5 + $0xf8] sm:$0xff]  ;;  %v91_v2 = vld [vmem:[#allocation5 + $0xf0] sm:$0xff]  ;;  %s454_s10 = smov [#allocation8]  }
  0x26   :  { %169 = vmatprep.mubr.f32.mxu0 %v453_v0  ;;  %v90_v3 = vld [vmem:[#allocation5 + $0xe8] sm:$0xff]  ;;  %105 = vmatprep.subr.mxu0 %v92_v1  ;;  %v89_v4 = vld [vmem:[#allocation5 + $0xe0] sm:$0xff]  ;;  %v88_v5 = vld [vmem:[#allocation5 + $0xd8] sm:$0xff]  ;;  %s341_s11 = sshll.u32 %s454_s10, 4  ;;  %s342_s11 = int_to_ptr.vmem [resolvable:$true] %s341_s11 }
  0x27   :  { %106 = vmatpush1.msra.mxu0 %v91_v2  ;;  %v87_v6 = vld [vmem:[#allocation5 + $0xd0] sm:$0xff]  ;;  %v86_v7 = vld [vmem:[#allocation5 + $0xc8] sm:$0xff]  ;;  %v85_v8 = vld [vmem:[#allocation5 + $0xc0] sm:$0xff]  ;;  %s422_s12 = scalar_lea.vmem %s342_s11, 256  ;;  %p427_p2 = scmp.lt.s32.totalorder %s342_s11, %s342_s11 }
  0x28   :  { %107 = vmatprep.subr.mxu0 %v90_v3  ;;  %v84_v9 = vld [vmem:[#allocation5 + $0xb8] sm:$0xff]  ;;  %v83_v10 = vld [vmem:[#allocation5 + $0xb0] sm:$0xff]  ;;  %v82_v11 = vld [vmem:[#allocation5 + $0xa8] sm:$0xff]  ;;  %p423_p1 = scmp.ne.s32.totalorder %s342_s11, %s422_s12  ;;  %p428_p3 = scmp.lt.s32.totalorder %s422_s12, %s422_s12 }
  0x29   :  { %108 = vmatpush1.msra.mxu0 %v89_v4  ;;  %v81_v12 = vld [vmem:[#allocation5 + $0xa0] sm:$0xff]  ;;  %v80_v13 = vld [vmem:[#allocation5 + $0x98] sm:$0xff]  ;;  %v79_v14 = vld [vmem:[#allocation5 + $0x90] sm:$0xff] }
  0x2a   :  { %109 = vmatprep.subr.mxu0 %v88_v5  ;;  %v217_v15 = vld [vmem:[#allocation7 + $0xf8] sm:$0xff]  ;;  %v216_v16 = vld [vmem:[#allocation7 + $0xf0] sm:$0xff]  ;;  %v215_v17 = vld [vmem:[#allocation7 + $0xe8] sm:$0xff]  ;;  %p429_p4 = por %p428_p3, %p427_p2 }
  0x2b   :  { %110 = vmatpush1.msra.mxu0 %v87_v6  ;;  %v78_v18 = vld [vmem:[#allocation5 + $0x88] sm:$0xff]  ;;  %262 = vmatprep.subr.mxu1 %v217_v15  ;;  %v214_v19 = vld [vmem:[#allocation7 + $0xe0] sm:$0xff]  ;;  %v213_v21 = vld [vmem:[#allocation7 + $0xd8] sm:$0xff] }
  0x2c   :  { %111 = vmatprep.subr.mxu0 %v86_v7  ;;  %v77_v20 = vld [vmem:[#allocation5 + $0x80] sm:$0xff]  ;;  %263 = vmatpush1.msra.mxu1 %v216_v16  ;;  %v76_v22 = vld [vmem:[#allocation5 + $0x78] sm:$0xff]  ;;  %v212_v23 = vld [vmem:[#allocation7 + $0xd0] sm:$0xff]  ;;  %p430_p5 = pnand %p429_p4, %p423_p1 }
  0x2d   :  { %112 = vmatpush1.msra.mxu0 %v85_v8  ;;  %264 = vmatprep.subr.mxu1 %v215_v17  ;;  %v75_v24 = vld [vmem:[#allocation5 + $0x70] sm:$0xff]  ;;  %v211_v25 = vld [vmem:[#allocation7 + $0xc8] sm:$0xff]  ;;  %v210_v27 = vld [vmem:[#allocation7 + $0xc0] sm:$0xff] }
  0x2e   :  { %113 = vmatprep.subr.mxu0 %v84_v9  ;;  %265 = vmatpush1.msra.mxu1 %v214_v19  ;;  %v74_v26 = vld [vmem:[#allocation5 + $0x68] sm:$0xff]  ;;  %v73_v28 = vld [vmem:[#allocation5 + $0x60] sm:$0xff]  ;;  %v209_v29 = vld [vmem:[#allocation7 + $0xb8] sm:$0xff] }
  0x2f   :  { %114 = vmatpush1.msra.mxu0 %v83_v10  ;;  %266 = vmatprep.subr.mxu1 %v213_v21  ;;  %v72_v30 = vld [vmem:[#allocation5 + $0x58] sm:$0xff]  ;;  %v208_v31 = vld [vmem:[#allocation7 + $0xb0] sm:$0xff]  ;;  %v207_v33 = vld [vmem:[#allocation7 + $0xa8] sm:$0xff] }
  0x30   :  { %115 = vmatprep.subr.mxu0 %v82_v11  ;;  %267 = vmatpush1.msra.mxu1 %v212_v23  ;;  %v71_v32 = vld [vmem:[#allocation5 + $0x50] sm:$0xff]  ;;  %v70_v34 = vld [vmem:[#allocation5 + $0x48] sm:$0xff]  ;;  %v206_v35 = vld [vmem:[#allocation7 + $0xa0] sm:$0xff] }
  0x31   :  { %116 = vmatpush1.msra.mxu0 %v81_v12  ;;  %268 = vmatprep.subr.mxu1 %v211_v25  ;;  %v69_v36 = vld [vmem:[#allocation5 + $0x40] sm:$0xff]  ;;  %v205_v37 = vld [vmem:[#allocation7 + $0x98] sm:$0xff]  ;;  %v204_v39 = vld [vmem:[#allocation7 + $0x90] sm:$0xff] }
  0x32   :  { %117 = vmatprep.subr.mxu0 %v80_v13  ;;  %269 = vmatpush1.msra.mxu1 %v210_v27  ;;  %v68_v38 = vld [vmem:[#allocation5 + $0x38] sm:$0xff]  ;;  %v67_v40 = vld [vmem:[#allocation5 + $0x30] sm:$0xff]  ;;  %v203_v41 = vld [vmem:[#allocation7 + $0x88] sm:$0xff] }
  0x33   :  { %118 = vmatpush1.msra.mxu0 %v79_v14  ;;  %270 = vmatprep.subr.mxu1 %v209_v29  ;;  %v66_v42 = vld [vmem:[#allocation5 + $0x28] sm:$0xff]  ;;  %v202_v43 = vld [vmem:[#allocation7 + $0x80] sm:$0xff]  ;;  %v201_v45 = vld [vmem:[#allocation7 + $0x78] sm:$0xff] }
  0x34   :  { %119 = vmatprep.subr.mxu0 %v78_v18  ;;  %271 = vmatpush1.msra.mxu1 %v208_v31  ;;  %v65_v44 = vld [vmem:[#allocation5 + $0x20] sm:$0xff]  ;;  %v64_v46 = vld [vmem:[#allocation5 + $0x18] sm:$0xff]  ;;  %v200_v47 = vld [vmem:[#allocation7 + $0x70] sm:$0xff] }
  0x35   :  { %120 = vmatpush1.msra.mxu0 %v77_v20  ;;  %272 = vmatprep.subr.mxu1 %v207_v33  ;;  %v63_v48 = vld [vmem:[#allocation5 + $0x10] sm:$0xff]  ;;  %v199_v49 = vld [vmem:[#allocation7 + $0x68] sm:$0xff]  ;;  %v198_v51 = vld [vmem:[#allocation7 + $0x60] sm:$0xff] }
  0x36   :  { %121 = vmatprep.subr.mxu0 %v76_v22  ;;  %273 = vmatpush1.msra.mxu1 %v206_v35  ;;  %v62_v50 = vld [vmem:[#allocation5 + $0x8] sm:$0xff]  ;;  %v61_v52 = vld [vmem:[#allocation5] sm:$0xff]  ;;  %v197_v53 = vld [vmem:[#allocation7 + $0x58] sm:$0xff] }
  0x37   :  { %122 = vmatpush1.msra.mxu0 %v75_v24  ;;  %274 = vmatprep.subr.mxu1 %v205_v37  ;;  %v60_v54 = vld [vmem:[#allocation2] sm:$0xff]  ;;  %v196_v55 = vld [vmem:[#allocation7 + $0x50] sm:$0xff]  ;;  %v195_v56 = vld [vmem:[#allocation7 + $0x48] sm:$0xff] }
  0x38   :  { %123 = vmatprep.subr.mxu0 %v74_v26  ;;  %275 = vmatpush1.msra.mxu1 %v204_v39  ;;  %v194_v57 = vld [vmem:[#allocation7 + $0x40] sm:$0xff]  ;;  %v193_v58 = vld [vmem:[#allocation7 + $0x38] sm:$0xff]  ;;  %v192_v59 = vld [vmem:[#allocation7 + $0x30] sm:$0xff] }
  0x39   :  { %124 = vmatpush1.msra.mxu0 %v73_v28  ;;  %276 = vmatprep.subr.mxu1 %v203_v41  ;;  %v191_v60 = vld [vmem:[#allocation7 + $0x28] sm:$0xff]  ;;  %v190_v61 = vld [vmem:[#allocation7 + $0x20] sm:$0xff]  ;;  %v189_v62 = vld [vmem:[#allocation7 + $0x18] sm:$0xff] }
  0x3a   :  { %125 = vmatprep.subr.mxu0 %v72_v30  ;;  %277 = vmatpush1.msra.mxu1 %v202_v43  ;;  %v188_v63 = vld [vmem:[#allocation7 + $0x10] sm:$0xff]  ;;  %v187_v0 = vld [vmem:[#allocation7 + $0x8] sm:$0xff]  ;;  %v186_v1 = vld [vmem:[#allocation7] sm:$0xff] }
  0x3b   :  { %126 = vmatpush1.msra.mxu0 %v71_v32  ;;  %278 = vmatprep.subr.mxu1 %v201_v45  ;;  %v249_v2 = vld [vmem:[#allocation7 + $0x1f8] sm:$0xff]  ;;  %v248_v3 = vld [vmem:[#allocation7 + $0x1f0] sm:$0xff]  ;;  %v247_v4 = vld [vmem:[#allocation7 + $0x1e8] sm:$0xff] }
  0x3c   :  { %127 = vmatprep.subr.mxu0 %v70_v34  ;;  %279 = vmatpush1.msra.mxu1 %v200_v47  ;;  %v246_v5 = vld [vmem:[#allocation7 + $0x1e0] sm:$0xff]  ;;  %v245_v6 = vld [vmem:[#allocation7 + $0x1d8] sm:$0xff]  ;;  %v244_v7 = vld [vmem:[#allocation7 + $0x1d0] sm:$0xff]  ;;  %v95_v34 = vlaneseq }
  0x3d   :  { %128 = vmatpush1.msra.mxu0 %v69_v36  ;;  %280 = vmatprep.subr.mxu1 %v199_v49  ;;  %v243_v8 = vld [vmem:[#allocation7 + $0x1c8] sm:$0xff]  ;;  %v242_v9 = vld [vmem:[#allocation7 + $0x1c0] sm:$0xff]  ;;  %v241_v10 = vld [vmem:[#allocation7 + $0x1b8] sm:$0xff] }
  0x3e   :  { %129 = vmatprep.subr.mxu0 %v68_v38  ;;  %281 = vmatpush1.msra.mxu1 %v198_v51  ;;  %v240_v11 = vld [vmem:[#allocation7 + $0x1b0] sm:$0xff]  ;;  %v239_v12 = vld [vmem:[#allocation7 + $0x1a8] sm:$0xff]  ;;  %v238_v13 = vld [vmem:[#allocation7 + $0x1a0] sm:$0xff]  ;;  %v96_v35 = vshrl.u32 %v95_v34, 7 }
  0x3f   :  { %130 = vmatpush1.msra.mxu0 %v67_v40  ;;  %282 = vmatprep.subr.mxu1 %v197_v53  ;;  %v237_v14 = vld [vmem:[#allocation7 + $0x198] sm:$0xff]  ;;  %v236_v15 = vld [vmem:[#allocation7 + $0x190] sm:$0xff]  ;;  %v235_v16 = vld [vmem:[#allocation7 + $0x188] sm:$0xff] }
  0x40   :  { %131 = vmatprep.subr.mxu0 %v66_v42  ;;  %283 = vmatpush1.msra.mxu1 %v196_v55  ;;  %v234_v17 = vld [vmem:[#allocation7 + $0x180] sm:$0xff]  ;;  %v233_v18 = vld [vmem:[#allocation7 + $0x178] sm:$0xff]  ;;  %v232_v19 = vld [vmem:[#allocation7 + $0x170] sm:$0xff]  ;;  %v97_v36 = vsub.s32 0, %v96_v35  ;;  %v101_v38 = vsub.s32 1, %v96_v35 }
  0x41   :  { %132 = vmatpush1.msra.mxu0 %v65_v44  ;;  %284 = vmatprep.subr.mxu1 %v195_v56  ;;  %v231_v20 = vld [vmem:[#allocation7 + $0x168] sm:$0xff]  ;;  %v230_v21 = vld [vmem:[#allocation7 + $0x160] sm:$0xff]  ;;  %v229_v22 = vld [vmem:[#allocation7 + $0x158] sm:$0xff] }
  0x42   :  { %133 = vmatprep.subr.mxu0 %v64_v46  ;;  %285 = vmatpush1.msra.mxu1 %v194_v57  ;;  %v228_v23 = vld [vmem:[#allocation7 + $0x150] sm:$0xff]  ;;  %v227_v24 = vld [vmem:[#allocation7 + $0x148] sm:$0xff]  ;;  %v226_v25 = vld [vmem:[#allocation7 + $0x140] sm:$0xff] }
  0x43   :  { %134 = vmatpush1.msra.mxu0 %v63_v48  ;;  %286 = vmatprep.subr.mxu1 %v193_v58  ;;  %v225_v26 = vld [vmem:[#allocation7 + $0x138] sm:$0xff]  ;;  %v224_v27 = vld [vmem:[#allocation7 + $0x130] sm:$0xff]  ;;  %v223_v28 = vld [vmem:[#allocation7 + $0x128] sm:$0xff] }
  0x44   :  { %135 = vmatprep.subr.mxu0 %v62_v50  ;;  %287 = vmatpush1.msra.mxu1 %v192_v59  ;;  %v222_v29 = vld [vmem:[#allocation7 + $0x120] sm:$0xff]  ;;  %v221_v30 = vld [vmem:[#allocation7 + $0x118] sm:$0xff]  ;;  %v220_v31 = vld [vmem:[#allocation7 + $0x110] sm:$0xff] }
  0x45   :  { %136 = vmatpush1.msra.mxu0 %v61_v52  ;;  %288 = vmatprep.subr.mxu1 %v191_v60  ;;  %v219_v32 = vld [vmem:[#allocation7 + $0x108] sm:$0xff]  ;;  %v218_v33 = vld [vmem:[#allocation7 + $0x100] sm:$0xff]  ;;  %v93_v37 = vld [vmem:[%s505_s2] sm:$0x3] }
  0x46   :  { %170 = vmatmul.mubr.f32.vlgmr.msra.gmra.mxu0 %v60_v54  ;;  %289 = vmatpush1.msra.mxu1 %v190_v61  ;;  %v98_v39 = vrot.slane %v93_v37, %v97_v36  ;;  %v102_v40 = vrot.slane %v93_v37, %v101_v38  ;;  %v250_v55 = vld [vmem:[%s507_s4] sm:$0x3] }
  0x47   :  { %290 = vmatprep.subr.mxu1 %v189_v62  ;;  %v255_v56 = vrot.slane %v250_v55, %v97_v36  ;;  %v259_v57 = vrot.slane %v250_v55, %v101_v38 }
  0x48   :  { %291 = vmatpush1.msra.mxu1 %v188_v63 }
  0x49   :  { %292 = vmatprep.subr.mxu1 %v187_v0 }
  0x4a   :  { %293 = vmatpush1.msra.mxu1 %v186_v1 }
  0x4b   :  { %294 = vmatprep.subr.mxu1 %v249_v2 }
  0x4c   :  { %295 = vmatpush2.msra.mxu1 %v248_v3 }
  0x4d   :  { %296 = vmatprep.subr.mxu1 %v247_v4 }
  0x4e   :  { %297 = vmatpush2.msra.mxu1 %v246_v5 }
  0x4f   :  { %298 = vmatprep.subr.mxu1 %v245_v6 }
  0x50   :  { %299 = vmatpush2.msra.mxu1 %v244_v7 }
  0x51   :  { %300 = vmatprep.subr.mxu1 %v243_v8 }
  0x52   :  { %301 = vmatpush2.msra.mxu1 %v242_v9 }
  0x53   :  { %302 = vmatprep.subr.mxu1 %v241_v10 }
  0x54   :  { %303 = vmatpush2.msra.mxu1 %v240_v11 }
  0x55   :  { %304 = vmatprep.subr.mxu1 %v239_v12 }
  0x56   :  { %305 = vmatpush2.msra.mxu1 %v238_v13 }
  0x57   :  { %306 = vmatprep.subr.mxu1 %v237_v14 }
  0x58   :  { %307 = vmatpush2.msra.mxu1 %v236_v15 }
  0x59   :  { %308 = vmatprep.subr.mxu1 %v235_v16 }
  0x5a   :  { %309 = vmatpush2.msra.mxu1 %v234_v17 }
  0x5b   :  { %310 = vmatprep.subr.mxu1 %v233_v18 }
  0x5c   :  { %311 = vmatpush2.msra.mxu1 %v232_v19 }
  0x5d   :  { %312 = vmatprep.subr.mxu1 %v231_v20 }
  0x5e   :  { %313 = vmatpush2.msra.mxu1 %v230_v21 }
  0x5f   :  { %314 = vmatprep.subr.mxu1 %v229_v22 }
  0x60   :  { %315 = vmatpush2.msra.mxu1 %v228_v23 }
  0x61   :  { %316 = vmatprep.subr.mxu1 %v227_v24 }
  0x62   :  { %317 = vmatpush2.msra.mxu1 %v226_v25 }
  0x63   :  { %318 = vmatprep.subr.mxu1 %v225_v26 }
  0x64   :  { %319 = vmatpush2.msra.mxu1 %v224_v27 }
  0x65   :  { %320 = vmatprep.subr.mxu1 %v223_v28 }
  0x66   :  { %321 = vmatpush2.msra.mxu1 %v222_v29 }
  0x67   :  { %322 = vmatprep.subr.mxu1 %v221_v30 }
  0x68   :  { %323 = vmatpush2.msra.mxu1 %v220_v31 }
  0x69   :  { %324 = vmatprep.subr.mxu1 %v219_v32 }
  0x6a   :  { %325 = vmatpush2.msra.mxu1 %v218_v33 }
 0x106   :  { %v171_v41 = vpop.f32.mrf.mxu0 }
 0x107   :  { %v172_v42 = vadd.f32 %v171_v41, %v98_v39 }
 0x108   :  { %v173_v43 = vpop.f32.mrf.mxu0 }
 0x109   :  { %v178_v44 = vmul.f32 0.70710677, %v172_v42  ;;  %v174_v45 = vadd.f32 %v173_v43, %v102_v40  ;;  %v176_v52 = vmul.f32 0.5, %v172_v42 }
 0x10b   :  { %358 = verf.f32 %v178_v44  ;;  %v179_v46 = vmul.f32 0.70710677, %v174_v45  ;;  %v177_v50 = vmul.f32 0.5, %v174_v45 }
 0x10d   :  { %360 = verf.f32 %v179_v46 }
 0x118   :  { %v359_v47 = vpop.eup %358 }
 0x119   :  { %v182_v49 = vadd.f32 1.0, %v359_v47 }
 0x11a   :  { %v361_v48 = vpop.eup %360 }
 0x11b   :  { %v183_v51 = vadd.f32 1.0, %v361_v48  ;;  %v184_v54 = vmul.f32 %v182_v49, %v176_v52 }
 0x11d   :  { %v185_v53 = vmul.f32 %v183_v51, %v177_v50 }
 0x11f   :  { %326 = vmatprep.mubr.f32.mxu1 %v185_v53 }
 0x120   :  { %327 = vmatmul.mubr.f32.vlgmr.msra.gmra.mxu1 %v184_v54 }
 0x1e0   :  { %v328_v58 = vpop.f32.mrf.mxu1 }
 0x1e1   :  { %v329_v59 = vadd.f32 %v328_v58, %v255_v56 }
 0x1e2   :  { %v330_v60 = vpop.f32.mrf.mxu1 }
 0x1e3   :  { %333 = vst [vmem:[#allocation8] sm:$0xff] %v329_v59  ;;  %v331_v61 = vadd.f32 %v330_v60, %v259_v57 }
 0x1e5   :  { %334 = vst [vmem:[#allocation8 + $0x8] sm:$0xff] %v331_v61 }
 0x1e6   :  { %433 = shalt.err (!%p430_p5)
}
 0x1e7   :  { %344 = dma.vmem_to_hbm [thread:$0]  %s342_s11, 256, %s508_s5, [#allocation4]  }
 0x1e8   :  { %446 = dma.done.wait [#allocation4], 256  }
 0x1e9   :  { %447 = vsyncadd [#allocation4], 4294967040 }
 0x1ea   :  { %348 = vsyncpa [#allocation3], 1 }
 0x1eb   :  { %349 = vsyncpa [#allocation6], 1 }
 0x1ec   :  { %350 = vsyncpa [#allocation4], 1 }

</bundles_post_ra>
